<compile_context>
chip_gen: v7x
topology: tpu7x:2x2x1
jax: 0.10.0
libtpu: 0.0.40
codegen_flags: <defaults>
</compile_context>

<pallas_src>
import functools

import jax
import jax.numpy as jnp
from jax.experimental import pallas as pl
from jax.experimental.pallas import tpu as pltpu

# ---- model / packing constants ------------------------------------------------------
_IN, _HID, _OUT = 4, 8, 3
_OUT_PAD = 4                 # 3 outputs + 1 zero-padding lane per sample
_SPR = 32                    # samples packed per 128-lane row (32 * 4 input lanes = 128)
_LANE = 128
_MIN_TILE = _SPR * 8         # 256 samples: 32 samples/row * 8 sublanes
_P1_ROWS = _SPR * _IN + 8    # 136: 128 rows of block-diag W1 + 1 row b1, padded to x8
_P2_ROWS = _SPR * _HID + 8   # 264: 256 rows of block-diag W2 + 1 row b2, padded to x8


def _round_up(x, m):
    return ((x + m - 1) // m) * m


def pack_params(w1, b1, w2, b2):
    """Pack parameters into two lane-dense, VMEM-resident block-diagonal slabs.

    p1: (136, 256)  rows 0..127 = kron(I_32, W1)  (block-diag, 32 copies of (4,8) W1)
                    row  128    = tile(b1, 32)
    p2: (264, 128)  rows 0..255 = kron(I_32, [W2 | 0])  (32 copies of (8,4) padded W2)
                    row  256    = tile([b2, 0], 32)
    """
    w1 = jnp.asarray(w1, jnp.float32).reshape(_IN, _HID)
    b1 = jnp.asarray(b1, jnp.float32).reshape(_HID)
    w2 = jnp.asarray(w2, jnp.float32).reshape(_HID, _OUT)
    b2 = jnp.asarray(b2, jnp.float32).reshape(_OUT)

    eye = jnp.eye(_SPR, dtype=jnp.float32)
    w1_bd = jnp.kron(eye, w1)                                   # (128, 256)
    w2_bd = jnp.kron(eye, jnp.pad(w2, ((0, 0), (0, 1))))        # (256, 128)
    b1_bd = jnp.tile(b1, _SPR)                                  # (256,)
    b2_bd = jnp.tile(jnp.pad(b2, (0, 1)), _SPR)                 # (128,)

    p1 = jnp.zeros((_P1_ROWS, _SPR * _HID), jnp.float32)
    p1 = p1.at[: _SPR * _IN, :].set(w1_bd)
    p1 = p1.at[_SPR * _IN, :].set(b1_bd)

    p2 = jnp.zeros((_P2_ROWS, _LANE), jnp.float32)
    p2 = p2.at[: _SPR * _HID, :].set(w2_bd)
    p2 = p2.at[_SPR * _HID, :].set(b2_bd)
    return p1, p2


def mlp_kernel(x_ref, p1_ref, p2_ref, o_ref):
    x = x_ref[...]                                   # (TR, 128): 32 samples/row, 4 lanes each
    w1 = p1_ref[0:_SPR * _IN, :]                     # (128, 256) block-diag W1
    b1 = p1_ref[_SPR * _IN:_SPR * _IN + 1, :]        # (1, 256)
    w2 = p2_ref[0:_SPR * _HID, :]                    # (256, 128) block-diag [W2 | 0]
    b2 = p2_ref[_SPR * _HID:_SPR * _HID + 1, :]      # (1, 128)

    # hidden = relu(x @ W1 + b1), 32 samples per row in 8-lane groups.
    h = jnp.dot(x, w1, preferred_element_type=jnp.float32) + b1      # (TR, 256)
    h = jnp.maximum(h, 0.0)

    # out = h @ W2 + b2, 32 samples per row in 4-lane groups (4th lane exactly 0).
    out = jnp.dot(h, w2, preferred_element_type=jnp.float32) + b2    # (TR, 128)
    o_ref[...] = out.astype(o_ref.dtype)             # dense, unmasked 128-lane store


@functools.partial(jax.jit, static_argnames=("block_b",))
def multiclass_forward(x, w1, b1, w2, b2, *, block_b=65536):
    """Forward pass of Multiclass: relu(x @ W1 + b1) @ W2 + b2.

    x: (B, 4). Weights in (in, out) layout (transposed vs. torch), biases 1-D.
    block_b: samples per grid step (rounded to a multiple of 256).
    """
    B = x.shape[0]
    x = x.astype(jnp.float32)

    # Tile selection. One tile = rows_per_tile x 512 B each way in VMEM; with double
    # buffering the per-step footprint is 4 * rows_per_tile * 512 B + ~0.5 MiB params
    # (4.5 MiB at the default 2048 rows/step -> fits v5e's 16 MiB scoped-VMEM default).
    b_pad_min = _round_up(B, _MIN_TILE)
    tb = max(_MIN_TILE, _round_up(min(block_b, b_pad_min), _MIN_TILE))
    if b_pad_min >= 2 * _MIN_TILE:
        # Keep >= 2 grid steps so ("parallel",) can shard across both v7x TensorCores.
        tb = min(tb, max(_MIN_TILE, (b_pad_min // 2) // _MIN_TILE * _MIN_TILE))
    b_pad = _round_up(B, tb)
    if b_pad != B:
        x = jnp.pad(x, ((0, b_pad - B), (0, 0)))

    # Free, contiguous reshape: 32 samples per 128-lane row -> dense HBM<->VMEM DMAs.
    rows = b_pad // _SPR
    rows_per_tile = tb // _SPR
    x_packed = x.reshape(rows, _SPR * _IN)                     # (rows, 128)

    p1, p2 = pack_params(w1, b1, w2, b2)                       # resident, DMA'd once
    grid = (b_pad // tb,)

    cost = pl.CostEstimate(
        flops=2 * rows * (_SPR * _IN * _SPR * _HID + _SPR * _HID * _SPR * _OUT_PAD),
        transcendentals=0,
        bytes_accessed=x_packed.size * 4 + p1.size * 4 + p2.size * 4
        + rows * _SPR * _OUT_PAD * 4,
    )

    out_packed = pl.pallas_call(
        mlp_kernel,
        out_shape=jax.ShapeDtypeStruct((rows, _SPR * _OUT_PAD), jnp.float32),
        grid=grid,
        in_specs=[
            pl.BlockSpec((rows_per_tile, _SPR * _IN), lambda i: (i, 0)),   # batch-tiled x
            pl.BlockSpec((_P1_ROWS, _SPR * _HID), lambda i: (0, 0)),       # resident W1/b1
            pl.BlockSpec((_P2_ROWS, _LANE), lambda i: (0, 0)),             # resident W2/b2
        ],
        out_specs=pl.BlockSpec((rows_per_tile, _SPR * _OUT_PAD), lambda i: (i, 0)),
        compiler_params=pltpu.CompilerParams(
            dimension_semantics=("parallel",),
        ),
        cost_estimate=cost,
    )(x_packed, p1, p2)

    # Free reshape back to one sample per row, strip padding lane + padded rows.
    return out_packed.reshape(b_pad, _OUT_PAD)[:B, :_OUT]


def init_params(key):
    """Deterministic init mimicking torch.nn.Linear default: U(-1/sqrt(fan_in), ...)."""
    k1, k2, k3, k4 = jax.random.split(key, 4)
    bound1 = 1.0 / jnp.sqrt(jnp.float32(_IN))
    bound2 = 1.0 / jnp.sqrt(jnp.float32(_HID))
    w1 = jax.random.uniform(k1, (_IN, _HID), jnp.float32, -bound1, bound1)  # (in, out)
    b1 = jax.random.uniform(k2, (_HID,), jnp.float32, -bound1, bound1)
    w2 = jax.random.uniform(k3, (_HID, _OUT), jnp.float32, -bound2, bound2)
    b2 = jax.random.uniform(k4, (_OUT,), jnp.float32, -bound2, bound2)
    return w1, b1, w2, b2


def _reference(x, w1, b1, w2, b2):
    return jnp.maximum(x @ w1 + b1, 0.0) @ w2 + b2


if __name__ == "__main__":
    key = jax.random.PRNGKey(0)
    kx, kp = jax.random.split(key)
    w1, b1, w2, b2 = init_params(kp)

    # Small batch (single grid step, heavy padding path).
    batch = 8
    x = jax.random.normal(kx, (batch, _IN), jnp.float32)
    out = jax.block_until_ready(multiclass_forward(x, w1, b1, w2, b2))
    ref = _reference(x, w1, b1, w2, b2)
    assert out.shape == (batch, _OUT)
    assert jnp.allclose(out, ref, atol=1e-4, rtol=1e-4)

    # Non-multiple batch with a small tile: multi-step grid + v7x >=2-step clamp + padding.
    batch2 = 600
    x2 = jax.random.normal(jax.random.PRNGKey(1), (batch2, _IN), jnp.float32)
    out2 = jax.block_until_ready(multiclass_forward(x2, w1, b1, w2, b2, block_b=256))
    ref2 = _reference(x2, w1, b1, w2, b2)
    assert out2.shape == (batch2, _OUT)
    assert jnp.allclose(out2, ref2, atol=1e-4, rtol=1e-4)

    print("KERNEL_OK")
</pallas_src>

<mosaic_0001>
module attributes {stable_mosaic.version = 11 : i64} {
  func.func @mlp_kernel(%arg0: i32, %arg1: memref<8x128xf32, #tpu.memory_space<vmem>>, %arg2: memref<136x256xf32, #tpu.memory_space<vmem>>, %arg3: memref<264x128xf32, #tpu.memory_space<vmem>>, %arg4: memref<8x128xf32, #tpu.memory_space<vmem>>) attributes {dimension_semantics = [#tpu.dimension_semantics<parallel>], iteration_bounds = array<i64: 1>, scalar_prefetch = 0 : i64, scratch_operands = 0 : i64, tpu.core_type = #tpu.core_type<tc>, window_params = [{transform_indices = @transform_0, window_bounds = array<i64: 8, 128>}, {pipeline_mode = #tpu.pipeline_mode<synchronous>, transform_indices = @transform_1, window_bounds = array<i64: 136, 256>}, {pipeline_mode = #tpu.pipeline_mode<synchronous>, transform_indices = @transform_2, window_bounds = array<i64: 264, 128>}, {transform_indices = @transform_3, window_bounds = array<i64: 8, 128>}]} {
    %c0 = arith.constant 0 : index
    %c0_0 = arith.constant 0 : index
    %0 = vector.load %arg1[%c0, %c0_0] : memref<8x128xf32, #tpu.memory_space<vmem>>, vector<8x128xf32>
    %c0_1 = arith.constant 0 : index
    %c0_2 = arith.constant 0 : index
    %1 = vector.load %arg2[%c0_1, %c0_2] : memref<136x256xf32, #tpu.memory_space<vmem>>, vector<128x256xf32>
    %c128 = arith.constant 128 : index
    %c0_3 = arith.constant 0 : index
    %2 = vector.load %arg2[%c128, %c0_3] : memref<136x256xf32, #tpu.memory_space<vmem>>, vector<1x256xf32>
    %c0_4 = arith.constant 0 : index
    %c0_5 = arith.constant 0 : index
    %3 = vector.load %arg3[%c0_4, %c0_5] : memref<264x128xf32, #tpu.memory_space<vmem>>, vector<256x128xf32>
    %c256 = arith.constant 256 : index
    %c0_6 = arith.constant 0 : index
    %4 = vector.load %arg3[%c256, %c0_6] : memref<264x128xf32, #tpu.memory_space<vmem>>, vector<1x128xf32>
    %cst = arith.constant dense<0.000000e+00> : vector<8x256xf32>
    %5 = tpu.matmul %0, %1, %cst {dimension_numbers = #tpu.dot_dimension_numbers<[1], [0], [0], [1], [0, 0, 1, 1], [], []>} : vector<8x128xf32>, vector<128x256xf32>, vector<8x256xf32> -> vector<8x256xf32>
    %6 = vector.broadcast %2 : vector<1x256xf32> to vector<8x256xf32>
    %7 = arith.addf %5, %6 : vector<8x256xf32>
    %cst_7 = arith.constant 0.000000e+00 : f32
    %8 = vector.broadcast %cst_7 : f32 to vector<8x256xf32>
    %9 = arith.maximumf %7, %8 : vector<8x256xf32>
    %cst_8 = arith.constant dense<0.000000e+00> : vector<8x128xf32>
    %10 = tpu.matmul %9, %3, %cst_8 {dimension_numbers = #tpu.dot_dimension_numbers<[1], [0], [0], [1], [0, 0, 1, 1], [], []>} : vector<8x256xf32>, vector<256x128xf32>, vector<8x128xf32> -> vector<8x128xf32>
    %11 = vector.broadcast %4 : vector<1x128xf32> to vector<8x128xf32>
    %12 = arith.addf %10, %11 : vector<8x128xf32>
    %c0_9 = arith.constant 0 : index
    %c0_10 = arith.constant 0 : index
    %13 = vector.load %arg4[%c0_9, %c0_10] : memref<8x128xf32, #tpu.memory_space<vmem>>, vector<8x128xf32>
    tpu.vector_store %arg4[%c0_9, %c0_10], %12 {strides = array<i32>} : memref<8x128xf32, #tpu.memory_space<vmem>>, vector<8x128xf32>,
    return
  }
  func.func @transform_0(%arg0: i32) -> (i32, i32) {
    %c0_i32 = arith.constant 0 : i32
    %c0_i32_0 = arith.constant 0 : i32
    return %arg0, %c0_i32 : i32, i32
  }
  func.func @transform_1(%arg0: i32) -> (i32, i32) {
    %c0_i32 = arith.constant 0 : i32
    %c0_i32_0 = arith.constant 0 : i32
    %c0_i32_1 = arith.constant 0 : i32
    return %c0_i32, %c0_i32_0 : i32, i32
  }
  func.func @transform_2(%arg0: i32) -> (i32, i32) {
    %c0_i32 = arith.constant 0 : i32
    %c0_i32_0 = arith.constant 0 : i32
    %c0_i32_1 = arith.constant 0 : i32
    return %c0_i32, %c0_i32_0 : i32, i32
  }
  func.func @transform_3(%arg0: i32) -> (i32, i32) {
    %c0_i32 = arith.constant 0 : i32
    %c0_i32_0 = arith.constant 0 : i32
    return %arg0, %c0_i32 : i32, i32
  }
}

</mosaic_0001>

<bundles_post_ra>
// kernel: tile.18
= control target key start
LH: loop header
LB: loop body
LE: loop exit
PB: predicated region body
PF: predicated region fallthrough
CT: control target
= control target key end

     0   :  { %s40_s0 = inlined_call_operand.vmem [shape: f32[4], index: 0, kind: input, shape index: {}]   ;;  %s41_s1 = inlined_call_operand.vmem [shape: f32[32,4], index: 1, kind: output, shape index: {}]  }
   0x1   :  { %v4_v0 = vld [vmem:[%s40_s0] ss:$0 sm:$0xff] }
   0x2   :  { %5 = vst [vmem:[%s41_s1] sm:$0xff] %v4_v0  ;;  %12 = vst [vmem:[%s41_s1 + $0x8] sm:$0xff] %v4_v0 }
   0x3   :  { %13 = vst [vmem:[%s41_s1 + $0x10] sm:$0xff] %v4_v0  ;;  %14 = vst [vmem:[%s41_s1 + $0x18] sm:$0xff] %v4_v0 }

// kernel: tile.13
= control target key start
LH: loop header
LB: loop body
LE: loop exit
PB: predicated region body
PF: predicated region fallthrough
CT: control target
= control target key end

     0   :  { %s40_s0 = inlined_call_operand.vmem [shape: f32[8], index: 0, kind: input, shape index: {}]   ;;  %s41_s1 = inlined_call_operand.vmem [shape: f32[32,8], index: 1, kind: output, shape index: {}]  }
   0x1   :  { %v4_v0 = vld [vmem:[%s40_s0] ss:$0 sm:$0xff] }
   0x2   :  { %5 = vst [vmem:[%s41_s1] sm:$0xff] %v4_v0  ;;  %12 = vst [vmem:[%s41_s1 + $0x8] sm:$0xff] %v4_v0 }
   0x3   :  { %13 = vst [vmem:[%s41_s1 + $0x10] sm:$0xff] %v4_v0  ;;  %14 = vst [vmem:[%s41_s1 + $0x18] sm:$0xff] %v4_v0 }

// kernel: multiclass_forward.1
= control target key start
LH: loop header
LB: loop body
LE: loop exit
PB: predicated region body
PF: predicated region fallthrough
CT: control target
= control target key end

     0   :  { %v347_v3 = vmov 0.0   ;;  %s572_s1 = inlined_call_operand.vmem [shape: f32[136,256], index: 1, kind: input, shape index: {}]   ;;  %s573_s2 = inlined_call_operand.vmem [shape: f32[264,128], index: 2, kind: input, shape index: {}]   ;;  %s574_s0 = inlined_call_operand.vmem [shape: f32[8,128], index: 0, kind: input, shape index: {}]   ;;  %s575_s3 = inlined_call_operand.vmem [shape: f32[8,128], index: 3, kind: output, shape index: {}]  }
   0x1   :  { %v16_v0 = vld [vmem:[%s572_s1 + $0x8] sm:$0xff]  ;;  %v18_v1 = vld [vmem:[%s572_s1 + $0x18] sm:$0xff]  ;;  %v15_v2 = vld [vmem:[%s572_s1] sm:$0xff]  ;;  %157 = vmatprep.mubr.f32.mxu0 %v347_v3 }
   0x2   :  { %v282_v4 = vpack.c.bf16 %v18_v1, %v16_v0  ;;  %v17_v5 = vld [vmem:[%s572_s1 + $0x10] sm:$0xff]  ;;  %v20_v6 = vld [vmem:[%s572_s1 + $0x28] sm:$0xff]  ;;  %v22_v7 = vld [vmem:[%s572_s1 + $0x38] sm:$0xff] }
   0x3   :  { %v284_v8 = vpack.c.bf16 %v17_v5, %v15_v2  ;;  %v286_v9 = vpack.c.bf16 %v22_v7, %v20_v6  ;;  %v19_v10 = vld [vmem:[%s572_s1 + $0x20] sm:$0xff]  ;;  %v21_v11 = vld [vmem:[%s572_s1 + $0x30] sm:$0xff]  ;;  %v24_v12 = vld [vmem:[%s572_s1 + $0x48] sm:$0xff] }
   0x4   :  { %283 = vmatprep.subr.bf16.mxu0 %v282_v4  ;;  %v26_v13 = vld [vmem:[%s572_s1 + $0x58] sm:$0xff]  ;;  %v288_v14 = vpack.c.bf16 %v21_v11, %v19_v10  ;;  %v23_v16 = vld [vmem:[%s572_s1 + $0x40] sm:$0xff]  ;;  %v25_v17 = vld [vmem:[%s572_s1 + $0x50] sm:$0xff] }
   0x5   :  { %285 = vmatpush1.bf16.msra.mxu0 %v284_v8  ;;  %v290_v15 = vpack.c.bf16 %v26_v13, %v24_v12  ;;  %v28_v18 = vld [vmem:[%s572_s1 + $0x68] sm:$0xff]  ;;  %v30_v19 = vld [vmem:[%s572_s1 + $0x78] sm:$0xff]  ;;  %v292_v20 = vpack.c.bf16 %v25_v17, %v23_v16  ;;  %v27_v22 = vld [vmem:[%s572_s1 + $0x60] sm:$0xff] }
   0x6   :  { %287 = vmatprep.subr.bf16.mxu0 %v286_v9  ;;  %v294_v21 = vpack.c.bf16 %v30_v19, %v28_v18  ;;  %v29_v23 = vld [vmem:[%s572_s1 + $0x70] sm:$0xff]  ;;  %v32_v24 = vld [vmem:[%s572_s1 + $0x88] sm:$0xff]  ;;  %v34_v25 = vld [vmem:[%s572_s1 + $0x98] sm:$0xff] }
   0x7   :  { %v31_v26 = vld [vmem:[%s572_s1 + $0x80] sm:$0xff]  ;;  %v33_v27 = vld [vmem:[%s572_s1 + $0x90] sm:$0xff]  ;;  %v66_v29 = vld [vmem:[%s573_s2 + $0x88] sm:$0xff]  ;;  %v296_v31 = vpack.c.bf16 %v29_v23, %v27_v22  ;;  %v298_v36 = vpack.c.bf16 %v34_v25, %v32_v24 }
   0x8   :  { %v65_v28 = vld [vmem:[%s573_s2 + $0x80] sm:$0xff]  ;;  %v50_v33 = vld [vmem:[%s573_s2 + $0x8] sm:$0xff]  ;;  %v67_v34 = vld [vmem:[%s573_s2 + $0x90] sm:$0xff]  ;;  %v300_v46 = vpack.c.bf16 %v33_v27, %v31_v26 }
   0x9   :  { %289 = vmatpush1.bf16.msra.mxu0 %v288_v14  ;;  %v49_v30 = vld [vmem:[%s573_s2] sm:$0xff]  ;;  %v314_v32 = vpack.c.bf16 %v66_v29, %v65_v28  ;;  %v68_v35 = vld [vmem:[%s573_s2 + $0x98] sm:$0xff]  ;;  %v51_v39 = vld [vmem:[%s573_s2 + $0x10] sm:$0xff] }
   0xa   :  { %291 = vmatprep.subr.bf16.mxu0 %v290_v15  ;;  %v316_v37 = vpack.c.bf16 %v50_v33, %v49_v30  ;;  %v318_v38 = vpack.c.bf16 %v68_v35, %v67_v34  ;;  %v52_v40 = vld [vmem:[%s573_s2 + $0x18] sm:$0xff]  ;;  %v69_v41 = vld [vmem:[%s573_s2 + $0xa0] sm:$0xff]  ;;  %v36_v42 = vld [vmem:[%s572_s1 + $0xa8] sm:$0xff]  ;;  %v83_v34 = vlaneseq }
   0xb   :  { %v38_v43 = vld [vmem:[%s572_s1 + $0xb8] sm:$0xff]  ;;  %315 = vmatprep.subr.bf16.mxu1 %v314_v32  ;;  %v70_v44 = vld [vmem:[%s573_s2 + $0xa8] sm:$0xff]  ;;  %v320_v45 = vpack.c.bf16 %v52_v40, %v51_v39  ;;  %v35_v47 = vld [vmem:[%s572_s1 + $0xa0] sm:$0xff] }
   0xc   :  { %317 = vmatpush3.bf16.msra.mxu1 %v316_v37  ;;  %v322_v48 = vpack.c.bf16 %v70_v44, %v69_v41  ;;  %v53_v49 = vld [vmem:[%s573_s2 + $0x20] sm:$0xff]  ;;  %v54_v50 = vld [vmem:[%s573_s2 + $0x28] sm:$0xff]  ;;  %v302_v51 = vpack.c.bf16 %v38_v43, %v36_v42  ;;  %v37_v52 = vld [vmem:[%s572_s1 + $0xb0] sm:$0xff]  ;;  %v84_v35 = vshrl.u32 %v83_v34, 7 }
   0xd   :  { %293 = vmatpush1.bf16.msra.mxu0 %v292_v20  ;;  %319 = vmatprep.subr.bf16.mxu1 %v318_v38  ;;  %v71_v53 = vld [vmem:[%s573_s2 + $0xb0] sm:$0xff]  ;;  %v72_v54 = vld [vmem:[%s573_s2 + $0xb8] sm:$0xff]  ;;  %v40_v55 = vld [vmem:[%s572_s1 + $0xc8] sm:$0xff]  ;;  %v324_v57 = vpack.c.bf16 %v54_v50, %v53_v49  ;;  %v304_v58 = vpack.c.bf16 %v37_v52, %v35_v47 }
   0xe   :  { %295 = vmatprep.subr.bf16.mxu0 %v294_v21  ;;  %v42_v56 = vld [vmem:[%s572_s1 + $0xd8] sm:$0xff]  ;;  %v39_v59 = vld [vmem:[%s572_s1 + $0xc0] sm:$0xff]  ;;  %v326_v60 = vpack.c.bf16 %v72_v54, %v71_v53  ;;  %v55_v61 = vld [vmem:[%s573_s2 + $0x30] sm:$0xff]  ;;  %v89_v38 = vsub.s32 1, %v84_v35 }
   0xf   :  { %v56_v62 = vld [vmem:[%s573_s2 + $0x38] sm:$0xff]  ;;  %v306_v63 = vpack.c.bf16 %v42_v56, %v40_v55  ;;  %v41_v0 = vld [vmem:[%s572_s1 + $0xd0] sm:$0xff]  ;;  %v73_v1 = vld [vmem:[%s573_s2 + $0xc0] sm:$0xff] }
  0x10   :  { %321 = vmatpush3.bf16.msra.mxu1 %v320_v45  ;;  %v74_v2 = vld [vmem:[%s573_s2 + $0xc8] sm:$0xff]  ;;  %v46_v4 = vld [vmem:[%s572_s1 + $0xf8] sm:$0xff]  ;;  %v328_v5 = vpack.c.bf16 %v56_v62, %v55_v61  ;;  %v308_v6 = vpack.c.bf16 %v41_v0, %v39_v59  ;;  %v43_v7 = vld [vmem:[%s572_s1 + $0xe0] sm:$0xff] }
  0x11   :  { %297 = vmatpush1.bf16.msra.mxu0 %v296_v31  ;;  %323 = vmatprep.subr.bf16.mxu1 %v322_v48  ;;  %v44_v3 = vld [vmem:[%s572_s1 + $0xe8] sm:$0xff]  ;;  %v330_v8 = vpack.c.bf16 %v74_v2, %v73_v1  ;;  %v57_v9 = vld [vmem:[%s573_s2 + $0x40] sm:$0xff]  ;;  %v45_v12 = vld [vmem:[%s572_s1 + $0xf0] sm:$0xff] }
  0x12   :  { %299 = vmatprep.subr.bf16.mxu0 %v298_v36  ;;  %v58_v10 = vld [vmem:[%s573_s2 + $0x48] sm:$0xff]  ;;  %v310_v11 = vpack.c.bf16 %v46_v4, %v44_v3  ;;  %v75_v13 = vld [vmem:[%s573_s2 + $0xd0] sm:$0xff]  ;;  %v76_v14 = vld [vmem:[%s573_s2 + $0xd8] sm:$0xff]  ;;  %v312_v16 = vpack.c.bf16 %v45_v12, %v43_v7  ;;  %v85_v36 = vsub.s32 0, %v84_v35 }
  0x13   :  { %v332_v15 = vpack.c.bf16 %v58_v10, %v57_v9  ;;  %v334_v17 = vpack.c.bf16 %v76_v14, %v75_v13  ;;  %v59_v18 = vld [vmem:[%s573_s2 + $0x50] sm:$0xff]  ;;  %v60_v19 = vld [vmem:[%s573_s2 + $0x58] sm:$0xff]  ;;  %v77_v20 = vld [vmem:[%s573_s2 + $0xe0] sm:$0xff] }
  0x14   :  { %325 = vmatpush3.bf16.msra.mxu1 %v324_v57  ;;  %v78_v21 = vld [vmem:[%s573_s2 + $0xe8] sm:$0xff]  ;;  %v336_v22 = vpack.c.bf16 %v60_v19, %v59_v18  ;;  %v14_v23 = vld [vmem:[%s574_s0] sm:$0xff]  ;;  %v79_v28 = vld [vmem:[%s573_s2 + $0xf0] sm:$0xff] }
  0x15   :  { %301 = vmatpush1.bf16.msra.mxu0 %v300_v46  ;;  %327 = vmatprep.subr.bf16.mxu1 %v326_v60  ;;  %v338_v24 = vpack.c.bf16 %v78_v21, %v77_v20  ;;  %v61_v25 = vld [vmem:[%s573_s2 + $0x60] sm:$0xff]  ;;  %v62_v26 = vld [vmem:[%s573_s2 + $0x68] sm:$0xff]  ;;  %v80_v29 = vld [vmem:[%s573_s2 + $0xf8] sm:$0xff] }
  0x16   :  { %303 = vmatprep.subr.bf16.mxu0 %v302_v51  ;;  %v340_v27 = vpack.c.bf16 %v62_v26, %v61_v25  ;;  %v342_v30 = vpack.c.bf16 %v80_v29, %v79_v28  ;;  %v63_v31 = vld [vmem:[%s573_s2 + $0x70] sm:$0xff]  ;;  %v64_v32 = vld [vmem:[%s573_s2 + $0x78] sm:$0xff]  ;;  %v245_v37 = vld [vmem:[%s572_s1 + $0x100] ss:$8 sm:$0x3] }
  0x17   :  { %v344_v33 = vpack.c.bf16 %v64_v32, %v63_v31  ;;  %v86_v39 = vrot.slane %v245_v37, %v85_v36  ;;  %v90_v40 = vrot.slane %v245_v37, %v89_v38  ;;  %v246_v48 = vld [vmem:[%s573_s2 + $0x100] ss:$0 sm:$0xff] }
  0x18   :  { %329 = vmatpush3.bf16.msra.mxu1 %v328_v5 }
  0x19   :  { %305 = vmatpush1.bf16.msra.mxu0 %v304_v58  ;;  %331 = vmatprep.subr.bf16.mxu1 %v330_v8 }
  0x1a   :  { %307 = vmatprep.subr.bf16.mxu0 %v306_v63 }
  0x1c   :  { %333 = vmatpush3.bf16.msra.mxu1 %v332_v15 }
  0x1d   :  { %309 = vmatpush1.bf16.msra.mxu0 %v308_v6  ;;  %335 = vmatprep.subr.bf16.mxu1 %v334_v17 }
  0x1e   :  { %311 = vmatprep.subr.bf16.mxu0 %v310_v11 }
  0x20   :  { %337 = vmatpush3.bf16.msra.mxu1 %v336_v22 }
  0x21   :  { %313 = vmatpush1.bf16.msra.mxu0 %v312_v16  ;;  %339 = vmatprep.subr.bf16.mxu1 %v338_v24 }
  0x24   :  { %158 = vmatmul.mubr.f32.vlgmr.msra.gmra.mrb[0].mxu0 %v14_v23  ;;  %341 = vmatpush3.bf16.msra.mxu1 %v340_v27 }
  0x25   :  { %343 = vmatprep.subr.bf16.mxu1 %v342_v30 }
  0x28   :  { %345 = vmatpush3.bf16.msra.mxu1 %v344_v33 }
  0xf7   :  { %v159_v41 = vpop.f32.mrb[0].mxu0 }
  0xf8   :  { %v160_v42 = vadd.f32 %v159_v41, %v86_v39  ;;  %v161_v43 = vpop.f32.mrb[1].mxu0 }
  0xf9   :  { %v162_v44 = vadd.f32 %v161_v43, %v90_v40 }
  0xfa   :  { %v164_v46 = vmax.f32 %v160_v42, 0.0 }
  0xfb   :  { %v165_v45 = vmax.f32 %v162_v44, 0.0 }
  0xfd   :  { %234 = vmatprep.mubr.f32.mxu1 %v165_v45 }
  0xfe   :  { %235 = vmatmul.mubr.f32.vlgmr.msra.gmra.mrb[0].mxu1 %v164_v46 }
 0x1d1   :  { %v279_v47 = vpop.f32.mrb[0].mxu1 }
 0x1d2   :  { %v280_v49 = vpop.f32.mrb[1].mxu1 }
 0x1d3   :  { %v281_v50 = vadd.f32 %v280_v49, %v279_v47 }
 0x1d5   :  { %v237_v51 = vadd.f32 %v281_v50, %v246_v48 }
 0x1d7   :  { %240 = vst [vmem:[%s575_s3] sm:$0xff] %v237_v51 }

</bundles_post_ra>
